<compile_context>
chip_gen: v7x
topology: tpu7x:2x2x1
jax: 0.10.0
libtpu: 0.0.40
codegen_flags: <defaults>
</compile_context>

<pallas_src>
import functools

import jax
import jax.numpy as jnp
from jax.experimental import pallas as pl
from jax.experimental.pallas import tpu as pltpu


def _mlp_kernel(x_ref, w1_ref, b1_ref, w2_ref, b2_ref, o_ref):
    # x_ref:  [20, TB]  bf16   (feature-major, batch on lanes)
    # w1_ref: [25, 20]  bf16   (PyTorch [out, in], VMEM-resident)
    # b1_ref: [25, 1]   f32
    # w2_ref: [3, 25]   bf16
    # b2_ref: [3, 1]    f32
    # o_ref:  [3, TB]   f32    (lane-dense stores across the batch tile)
    x = x_ref[...]
    # Linear1: W1 @ x -> [25, TB], f32 accumulation on the MXU.
    h = jnp.dot(w1_ref[...], x, preferred_element_type=jnp.float32)
    h = jnp.maximum(h + b1_ref[...], 0.0)            # bias + ReLU in f32 (VPU)
    # Linear2: W2 @ h -> [3, TB]
    y = jnp.dot(w2_ref[...], h.astype(jnp.bfloat16),
                preferred_element_type=jnp.float32)
    o_ref[...] = jnp.maximum(y + b2_ref[...], 0.0)   # final ReLU, f32 out


@functools.partial(jax.jit, static_argnames=("block_b",))
def model_prop_net(x, w1, b1, w2, b2, *, block_b=None):
    """Forward pass.

    x:  [B, 20] f32 (PyTorch input layout)
    w1: [25, 20], b1: [25], w2: [3, 25], b2: [3]  (native PyTorch Linear layout)
    returns [B, 3] f32.
    """
    B, f_in = x.shape
    f_hid = w1.shape[0]
    f_out = w2.shape[0]

    # Batch tile = lane axis; must be a multiple of 128.  Default: up to 4096 lanes
    # per step (x tile 20x4096 bf16 = 160 KiB, out tile 3x4096 f32 = 48 KiB; tiny
    # even double-buffered), which minimizes the ~0.35 us per-grid-step overhead.
    if block_b is None:
        block_b = min(4096, pl.cdiv(B, 128) * 128)
    assert block_b % 128 == 0
    grid_b = pl.cdiv(B, block_b)
    b_pad = grid_b * block_b

    # Feature-major [F, B] layout, lane-padded batch, bf16 MXU inputs.  Under jit
    # the cast + transpose + pad fuse into one XLA producer op for the kernel.
    xt = jnp.zeros((f_in, b_pad), jnp.bfloat16).at[:, :B].set(
        x.astype(jnp.bfloat16).T)
    w1b = w1.astype(jnp.bfloat16)
    w2b = w2.astype(jnp.bfloat16)
    b1c = b1.astype(jnp.float32).reshape(f_hid, 1)
    b2c = b2.astype(jnp.float32).reshape(f_out, 1)

    # Weights/biases: full-array blocks with a constant index_map -> resident in
    # VMEM across all batch tiles (no per-step re-DMA).
    def resident(a):
        return pl.BlockSpec(a.shape, lambda i, _nd=a.ndim: (0,) * _nd)

    flops = 2 * b_pad * (f_in * f_hid + f_hid * f_out)
    bytes_accessed = (xt.size * 2 + w1b.size * 2 + w2b.size * 2
                      + b1c.size * 4 + b2c.size * 4 + f_out * b_pad * 4)

    out = pl.pallas_call(
        _mlp_kernel,
        out_shape=jax.ShapeDtypeStruct((f_out, b_pad), jnp.float32),
        grid_spec=pltpu.PrefetchScalarGridSpec(
            num_scalar_prefetch=0,
            grid=(grid_b,),
            in_specs=[
                pl.BlockSpec((f_in, block_b), lambda i: (0, i)),   # stream x tiles
                resident(w1b), resident(b1c), resident(w2b), resident(b2c),
            ],
            out_specs=pl.BlockSpec((f_out, block_b), lambda i: (0, i)),
        ),
        compiler_params=pltpu.CompilerParams(
            dimension_semantics=("parallel",)),  # shard batch grid over v7x's 2 TCs
        cost_estimate=pl.CostEstimate(
            flops=flops, transcendentals=0, bytes_accessed=bytes_accessed),
    )(xt, w1b, b1c, w2b, b2c)

    # Back to PyTorch [B, 3] layout; drop lane padding outside the kernel.
    return out[:, :B].T


def _torch_linear_init(key, out_f, in_f):
    """Deterministic init mimicking torch.nn.Linear (uniform +/- 1/sqrt(fan_in))."""
    kw, kb = jax.random.split(key)
    bound = 1.0 / jnp.sqrt(jnp.float32(in_f))
    w = jax.random.uniform(kw, (out_f, in_f), jnp.float32, -bound, bound)
    b = jax.random.uniform(kb, (out_f,), jnp.float32, -bound, bound)
    return w, b


def _reference(x, w1, b1, w2, b2):
    """Plain-JAX reference with the same bf16-input / f32-accumulate math."""
    xb = x.astype(jnp.bfloat16).astype(jnp.float32)
    w1b = w1.astype(jnp.bfloat16).astype(jnp.float32)
    w2b = w2.astype(jnp.bfloat16).astype(jnp.float32)
    h = jnp.maximum(xb @ w1b.T + b1, 0.0)
    hb = h.astype(jnp.bfloat16).astype(jnp.float32)
    return jnp.maximum(hb @ w2b.T + b2, 0.0)


if __name__ == "__main__":
    key = jax.random.PRNGKey(0)
    kx, k1, k2, kx2 = jax.random.split(key, 4)
    w1, b1 = _torch_linear_init(k1, 25, 20)
    w2, b2 = _torch_linear_init(k2, 3, 25)

    # Small batch (single grid step, batch lane-padded to 128).
    B = 8
    x = jax.random.normal(kx, (B, 20), jnp.float32)
    out = jax.block_until_ready(model_prop_net(x, w1, b1, w2, b2))
    ref = _reference(x, w1, b1, w2, b2)
    assert out.shape == (B, 3)
    assert jnp.allclose(out, ref, atol=1e-3, rtol=1e-3)

    # Ragged larger batch exercising a multi-step, pipelined batch grid.
    B2 = 300
    x2 = jax.random.normal(kx2, (B2, 20), jnp.float32)
    out2 = jax.block_until_ready(model_prop_net(x2, w1, b1, w2, b2, block_b=128))
    ref2 = _reference(x2, w1, b1, w2, b2)
    assert out2.shape == (B2, 3)
    assert jnp.allclose(out2, ref2, atol=1e-3, rtol=1e-3)

    print("KERNEL_OK")
</pallas_src>

<mosaic_0001>
module attributes {stable_mosaic.version = 11 : i64} {
  func.func @_mlp_kernel(%arg0: i32, %arg1: memref<20x128xbf16, #tpu.memory_space<vmem>>, %arg2: memref<25x20xbf16, #tpu.memory_space<vmem>>, %arg3: memref<25x1xf32, #tpu.memory_space<vmem>>, %arg4: memref<3x25xbf16, #tpu.memory_space<vmem>>, %arg5: memref<3x1xf32, #tpu.memory_space<vmem>>, %arg6: memref<3x128xf32, #tpu.memory_space<vmem>>) attributes {dimension_semantics = [#tpu.dimension_semantics<parallel>], iteration_bounds = array<i64: 1>, scalar_prefetch = 0 : i64, scratch_operands = 0 : i64, tpu.core_type = #tpu.core_type<tc>, window_params = [{transform_indices = @transform_0, window_bounds = array<i64: 20, 128>}, {pipeline_mode = #tpu.pipeline_mode<synchronous>, transform_indices = @transform_1, window_bounds = array<i64: 25, 20>}, {pipeline_mode = #tpu.pipeline_mode<synchronous>, transform_indices = @transform_2, window_bounds = array<i64: 25, 1>}, {pipeline_mode = #tpu.pipeline_mode<synchronous>, transform_indices = @transform_3, window_bounds = array<i64: 3, 25>}, {pipeline_mode = #tpu.pipeline_mode<synchronous>, transform_indices = @transform_4, window_bounds = array<i64: 3, 1>}, {transform_indices = @transform_5, window_bounds = array<i64: 3, 128>}]} {
    %c0 = arith.constant 0 : index
    %c0_0 = arith.constant 0 : index
    %0 = vector.load %arg1[%c0, %c0_0] : memref<20x128xbf16, #tpu.memory_space<vmem>>, vector<20x128xbf16>
    %c0_1 = arith.constant 0 : index
    %c0_2 = arith.constant 0 : index
    %1 = vector.load %arg2[%c0_1, %c0_2] : memref<25x20xbf16, #tpu.memory_space<vmem>>, vector<25x20xbf16>
    %cst = arith.constant dense<0.000000e+00> : vector<25x128xf32>
    %2 = tpu.matmul %1, %0, %cst {dimension_numbers = #tpu.dot_dimension_numbers<[1], [0], [0], [1], [0, 0, 1, 1], [], []>} : vector<25x20xbf16>, vector<20x128xbf16>, vector<25x128xf32> -> vector<25x128xf32>
    %c0_3 = arith.constant 0 : index
    %c0_4 = arith.constant 0 : index
    %3 = vector.load %arg3[%c0_3, %c0_4] : memref<25x1xf32, #tpu.memory_space<vmem>>, vector<25x1xf32>
    %4 = vector.broadcast %3 : vector<25x1xf32> to vector<25x128xf32>
    %5 = arith.addf %2, %4 : vector<25x128xf32>
    %cst_5 = arith.constant 0.000000e+00 : f32
    %6 = vector.broadcast %cst_5 : f32 to vector<25x128xf32>
    %7 = arith.maximumf %5, %6 : vector<25x128xf32>
    %c0_6 = arith.constant 0 : index
    %c0_7 = arith.constant 0 : index
    %8 = vector.load %arg4[%c0_6, %c0_7] : memref<3x25xbf16, #tpu.memory_space<vmem>>, vector<3x25xbf16>
    %9 = arith.truncf %7 : vector<25x128xf32> to vector<25x128xbf16>
    %cst_8 = arith.constant dense<0.000000e+00> : vector<3x128xf32>
    %10 = tpu.matmul %8, %9, %cst_8 {dimension_numbers = #tpu.dot_dimension_numbers<[1], [0], [0], [1], [0, 0, 1, 1], [], []>} : vector<3x25xbf16>, vector<25x128xbf16>, vector<3x128xf32> -> vector<3x128xf32>
    %c0_9 = arith.constant 0 : index
    %c0_10 = arith.constant 0 : index
    %11 = vector.load %arg5[%c0_9, %c0_10] : memref<3x1xf32, #tpu.memory_space<vmem>>, vector<3x1xf32>
    %12 = vector.broadcast %11 : vector<3x1xf32> to vector<3x128xf32>
    %13 = arith.addf %10, %12 : vector<3x128xf32>
    %cst_11 = arith.constant 0.000000e+00 : f32
    %14 = vector.broadcast %cst_11 : f32 to vector<3x128xf32>
    %15 = arith.maximumf %13, %14 : vector<3x128xf32>
    %c0_12 = arith.constant 0 : index
    %c0_13 = arith.constant 0 : index
    %16 = vector.load %arg6[%c0_12, %c0_13] : memref<3x128xf32, #tpu.memory_space<vmem>>, vector<3x128xf32>
    tpu.vector_store %arg6[%c0_12, %c0_13], %15 {strides = array<i32>} : memref<3x128xf32, #tpu.memory_space<vmem>>, vector<3x128xf32>,
    return
  }
  func.func @transform_0(%arg0: i32) -> (i32, i32) {
    %c0_i32 = arith.constant 0 : i32
    %c0_i32_0 = arith.constant 0 : i32
    return %c0_i32, %arg0 : i32, i32
  }
  func.func @transform_1(%arg0: i32) -> (i32, i32) {
    %c0_i32 = arith.constant 0 : i32
    %c0_i32_0 = arith.constant 0 : i32
    %c0_i32_1 = arith.constant 0 : i32
    return %c0_i32, %c0_i32_0 : i32, i32
  }
  func.func @transform_2(%arg0: i32) -> (i32, i32) {
    %c0_i32 = arith.constant 0 : i32
    %c0_i32_0 = arith.constant 0 : i32
    %c0_i32_1 = arith.constant 0 : i32
    return %c0_i32, %c0_i32_0 : i32, i32
  }
  func.func @transform_3(%arg0: i32) -> (i32, i32) {
    %c0_i32 = arith.constant 0 : i32
    %c0_i32_0 = arith.constant 0 : i32
    %c0_i32_1 = arith.constant 0 : i32
    return %c0_i32, %c0_i32_0 : i32, i32
  }
  func.func @transform_4(%arg0: i32) -> (i32, i32) {
    %c0_i32 = arith.constant 0 : i32
    %c0_i32_0 = arith.constant 0 : i32
    %c0_i32_1 = arith.constant 0 : i32
    return %c0_i32, %c0_i32_0 : i32, i32
  }
  func.func @transform_5(%arg0: i32) -> (i32, i32) {
    %c0_i32 = arith.constant 0 : i32
    %c0_i32_0 = arith.constant 0 : i32
    return %c0_i32, %arg0 : i32, i32
  }
}

</mosaic_0001>

<bundles_post_ra>
// kernel: model_prop_net.1
= control target key start
LH: loop header
LB: loop body
LE: loop exit
PB: predicated region body
PF: predicated region fallthrough
CT: control target
= control target key end

     0   :  { %vm71_vm0 = vcmask 162816   ;;  %v242_v0 = vmov 0   ;;  %vm78_vm1 = vcmask 1041408   ;;  %v243_v11 = vmov 0.0   ;;  %s311_s0 = inlined_call_operand.vmem [shape: bf16[20,128], index: 0, kind: input, shape index: {}]   ;;  %s312_s1 = inlined_call_operand.vmem [shape: bf16[25,20], index: 1, kind: input, shape index: {}]   ;;  %s313_s2 = inlined_call_operand.vmem [shape: f32[25,1], index: 2, kind: input, shape index: {}]   ;;  %s314_s4 = inlined_call_operand.vmem [shape: f32[3,1], index: 4, kind: input, shape index: {}]   ;;  %s315_s3 = inlined_call_operand.vmem [shape: bf16[3,25], index: 3, kind: input, shape index: {}]   ;;  %s316_s5 = inlined_call_operand.vmem [shape: f32[3,128], index: 5, kind: output, shape index: {}]  }
   0x1   :  { %236 = vset.pattern.permute.xlu0 %v242_v0  ;;  %237 = vset.pattern.permute.xlu1 %v242_v0  ;;  %v238_v1 = vld [vmem:[%s311_s0] sm:$0xff]   ;;  %v239_v2 = vld [vmem:[%s311_s0 + $0x8] ss:$0 sps:$4 sm:$0x33]   ;;  %v30_v5 = vld [vmem:[%s313_s2 + $0x10] sm:$0xff]  ;;  %vm244_vm2 = vmmov 0  }
   0x2   :  { %v240_v3 = vld [vmem:[%s312_s1] sm:$0xff]   ;;  %215 = vmatprep.subr.bf16.mxu0 %v238_v1  ;;  %v80_v6 = vsel %vm78_vm1, %v239_v2, 0  ;;  %v29_v7 = vld [vmem:[%s313_s2 + $0x8] sm:$0xff]  ;;  %44 = vperm.xlu1 %237, %v30_v5   ;;  %v31_v9 = vld [vmem:[%s313_s2 + $0x18] sm:$0x1]  ;;  %vm148_vm3 = vcmask 1043456  }
   0x3   :  { %v28_v4 = vld [vmem:[%s313_s2] sm:$0xff]  ;;  %216 = vmatpush3.bf16.msra.mxu0 %v238_v1  ;;  %219 = vmatprep.mubr.msk.bf16.mxu0 %vm71_vm0, %v240_v3  ;;  %v241_v8 = vld [vmem:[%s312_s1 + $0x8] sm:$0x1f]   ;;  %vm149_vm4 = vcmask 1044480   ;;  %v245_v28 = vmov 65535   ;;  %vm144_vm5 = vcmask 203776  }
   0x4   :  { %231 = vmatprep.subr.msk.bf16.mxu0 %vm78_vm1, %v239_v2  ;;  %34 = vperm.xlu0 %236, %v28_v4   ;;  %v138_v10 = vld [vmem:[%s314_s4] sm:$0x7]  ;;  %v150_v29 = vsel %vm148_vm3, 4294967295, %v245_v28 }
   0x5   :  { %223 = vmatprep.subr.bf16.mxu1 %v243_v11  ;;  %227 = vmatprep.mubr.msk.bf16.mxu1 %vm244_vm2, %v243_v11  ;;  %v151_v32 = vsel %vm149_vm4, %v150_v29, 0  ;;  %v135_v34 = vld [vmem:[%s315_s3] sm:$0x3] }
   0x6   :  { %49 = vperm.xlu1 %237, %v31_v9  }
   0x7   :  { %218 = vmatpush3.bf16.msra.mxu0 %v80_v6 }
   0x8   :  { %39 = vperm.xlu0 %236, %v29_v7  }
   0xa   :  { %220 = vmatmul.mubr.msk.bf16.vlgmr.msra.gmra.mrb[0].mxu0 %vm71_vm0, %v241_v8 }
   0xc   :  { %141 = vperm.xlu0 %236, %v138_v10  }
  0x81   :  { %v45_v12 = vpop.permute.xlu1 %44 }
  0x83   :  { %v35_v13 = vpop.permute.xlu0 %34 }
  0x85   :  { %v50_v15 = vpop.permute.xlu1 %49 }
  0x87   :  { %v40_v20 = vpop.permute.xlu0 %39 }
  0x8b   :  { %v142_v35 = vpop.permute.xlu0 %141 }
  0xdd   :  { %v221_v14 = vpop.f32.mrb[0].mxu0 }
  0xde   :  { %v125_v16 = vadd.f32 %v221_v14, %v45_v12  ;;  %v116_v17 = vpop.f32.mrb[1].mxu0 }
  0xdf   :  { %v117_v18 = vadd.f32 %v116_v17, %v35_v13  ;;  %v222_v19 = vpop.f32.mrb[2].mxu0 }
  0xe0   :  { %v128_v21 = vadd.f32 %v222_v19, %v50_v15  ;;  %v119_v22 = vpop.f32.mrb[3].mxu0  ;;  %v133_v24 = vmax.f32 %v125_v16, 0.0 }
  0xe1   :  { %v120_v23 = vadd.f32 %v119_v22, %v40_v20  ;;  %v131_v26 = vmax.f32 %v117_v18, 0.0 }
  0xe2   :  { %v134_v25 = vmax.f32 %v128_v21, 0.0 }
  0xe3   :  { %v132_v27 = vmax.f32 %v120_v23, 0.0 }
  0xe4   :  { %v137_v30 = vpack.c.bf16 %v134_v25, %v133_v24 }
  0xe5   :  { %v136_v31 = vpack.c.bf16 %v132_v27, %v131_v26 }
  0xe6   :  { %v153_v33 = vand.u32 %v151_v32, %v137_v30 }
  0xe7   :  { %224 = vmatpush3.bf16.msra.mxu1 %v136_v31 }
  0xe8   :  { %225 = vmatprep.subr.bf16.mxu1 %v243_v11 }
  0xeb   :  { %226 = vmatpush3.bf16.msra.mxu1 %v153_v33 }
  0xee   :  { %228 = vmatmul.mubr.msk.bf16.vlgmr.msra.gmra.mrb[0].mxu1 %vm144_vm5, %v135_v34 }
 0x1c1   :  { %v189_v36 = vpop.f32.mrb[0].mxu1 }
 0x1c2   :  { %v190_v37 = vadd.f32 %v189_v36, %v142_v35  ;;  %v229_v38 = vpop.f32.mrb[1].mxu1 }
 0x1c3   :  { %v192_v39 = vpop.f32.mrb[2].mxu1 }
 0x1c4   :  { %v195_v40 = vmax.f32 %v190_v37, 0.0  ;;  %v230_v41 = vpop.f32.mrb[3].mxu1 }
 0x1c6   :  { %196 = vst [vmem:[%s316_s5] sm:$0x7] %v195_v40 }

</bundles_post_ra>
